<compile_context>
chip_gen: v6e
topology: v6e:2x2x1
jax: 0.10.0
libtpu: 0.0.40
codegen_flags: <defaults>
</compile_context>

<pallas_src>
import jax
import jax.numpy as jnp
from jax.experimental import pallas as pl
from jax.experimental.pallas import tpu as pltpu


# ----------------------------------------------------------------------------
# Block-size helpers
# ----------------------------------------------------------------------------
def _row_block(N, target=512):
    """Row-block size + padded row count for the projection GEMMs.

    Block == full dim is always legal; otherwise the block must be a multiple of 8.
    If N has no suitable divisor we pad N up to a multiple of `target` (review fix:
    no silent fallback to one huge row block).
    """
    if N <= target:
        return N, N
    for rb in range(target, 7, -1):
        if N % rb == 0 and rb % 8 == 0:
            return rb, N
    rb = target                                   # multiple of 8 by construction
    return rb, ((N + rb - 1) // rb) * rb


def _col_block(M, target=512):
    """Column-block size: a multiple of 128 (lane-dense stores) or the full M."""
    if M <= target:
        return M
    for cb in range(target - (target % 128), 0, -128):
        if M % cb == 0:
            return cb
    return M


def _recurrence_block_bytes(tc, B, H, gate_bytes, out_bytes):
    """Double-buffered VMEM block footprint of the recurrence pipeline."""
    gates = 2 * 2 * tc * B * 4 * H * gate_bytes   # 2 dirs x 2 buffers
    outs = 2 * 2 * tc * B * H * out_bytes
    wts = 2 * 2 * H * 4 * H * gate_bytes
    scr = 4 * B * H * 4                           # f32 h/c carries
    return gates + outs + wts + scr


def _choose_time_chunk(T, B, H, gate_bytes, out_bytes, target=32,
                       block_budget=20 << 20):
    """Largest divisor of T (<= target) whose pipeline blocks fit the budget.

    The 20 MiB block budget (+ explicit vmem_limit_bytes) keeps the recurrence well
    inside v7x's 64 MiB per-core VMEM as well as v5e/v6e's 128 MiB.
    """
    best = 1
    for tc in range(1, min(T, target) + 1):
        if T % tc == 0 and _recurrence_block_bytes(
                tc, B, H, gate_bytes, out_bytes) <= block_budget:
            best = tc
    return best


# ----------------------------------------------------------------------------
# Pallas kernels
# ----------------------------------------------------------------------------
def _proj1_kernel(x_ref, w_ref, b_ref, o_ref):
    """o = x @ w + b   (time-parallel input projection, layer 0 / generic GEMM)."""
    o_ref[...] = (
        jnp.dot(x_ref[...], w_ref[...], preferred_element_type=jnp.float32)
        + b_ref[...]
    ).astype(o_ref.dtype)


def _proj2_kernel(a_ref, b_ref, wa_ref, wb_ref, bias_ref, o_ref):
    """o = a @ wa + b @ wb + bias  (consumes fwd/bwd halves without concat)."""
    acc = jnp.dot(a_ref[...], wa_ref[...], preferred_element_type=jnp.float32)
    acc = acc + jnp.dot(b_ref[...], wb_ref[...], preferred_element_type=jnp.float32)
    o_ref[...] = (acc + bias_ref[...]).astype(o_ref.dtype)


def _lstm_cell(pre, h, c_state, whh_ref, H):
    """One LSTM cell update.  pre = x @ W_ih^T + b_ih + b_hh (f32 or bf16).

    W_hh is streamed from its VMEM ref inside the dot (no hoisted full-weight
    value -> no vreg-spill risk for large H).  Gate math stays f32.
    """
    gates = pre.astype(jnp.float32) + jnp.dot(
        h.astype(whh_ref.dtype), whh_ref[...],
        preferred_element_type=jnp.float32)
    # Gate-wise activations: sigmoid on i/f/o, tanh on g only (~5*B*H EUP work
    # per step instead of ~9*B*H).  Numerically identical to full-width+slice.
    i = jax.nn.sigmoid(gates[:, 0 * H:1 * H])
    f = jax.nn.sigmoid(gates[:, 1 * H:2 * H])
    g = jnp.tanh(gates[:, 2 * H:3 * H])
    o = jax.nn.sigmoid(gates[:, 3 * H:4 * H])
    c_new = f * c_state + i * g
    h_new = o * jnp.tanh(c_new)
    return h_new, c_new


def _bilstm_chunk_kernel(xgf_ref, xgb_ref, whhf_ref, whhb_ref,
                         hf_ref, hb_ref,
                         hf_s, cf_s, hb_s, cb_s):
    """Fused fwd+bwd LSTM recurrence over one time chunk (single-TensorCore path).

    xgf_ref/xgb_ref: (Tc, B, 4H) precomputed gate pre-activations per direction.
                     The backward block arrives in reversed chunk order via its
                     index_map; within the chunk we walk it backwards.
    whh*_ref:        (H, 4H) transposed recurrent weights.
    hf_ref/hb_ref:   (Tc, B, H) hidden-sequence output blocks.
    *_s:             (B, H) f32 VMEM scratch carrying h/c across grid steps.
    """
    c = pl.program_id(0)
    Tc = xgf_ref.shape[0]
    H = hf_s.shape[1]

    @pl.when(c == 0)
    def _():
        hf_s[...] = jnp.zeros_like(hf_s)
        cf_s[...] = jnp.zeros_like(cf_s)
        hb_s[...] = jnp.zeros_like(hb_s)
        cb_s[...] = jnp.zeros_like(cb_s)

    def step(t, carry):
        # forward direction: ascending local time
        h_new, c_new = _lstm_cell(xgf_ref[t], hf_s[...], cf_s[...], whhf_ref, H)
        hf_s[...] = h_new
        cf_s[...] = c_new
        hf_ref[t] = h_new.astype(hf_ref.dtype)

        # backward direction: walk the (already chunk-reversed) block backwards
        tb = Tc - 1 - t
        h_new_b, c_new_b = _lstm_cell(xgb_ref[tb], hb_s[...], cb_s[...], whhb_ref, H)
        hb_s[...] = h_new_b
        cb_s[...] = c_new_b
        hb_ref[tb] = h_new_b.astype(hb_ref.dtype)
        return carry

    jax.lax.fori_loop(0, Tc, step, 0, unroll=True if Tc <= 32 else 8)


def _lstm_dir_chunk_kernel(xg_ref, whh_ref, h_ref, h_s, c_s):
    """One direction per grid step (direction axis is 'parallel' -> v7x 2-TC split).

    Grid = (2, NC): axis 0 = direction (parallel), axis 1 = time chunk (arbitrary).
    """
    d = pl.program_id(0)            # 0 = forward, 1 = backward
    c = pl.program_id(1)            # sequential time chunk
    Tc = xg_ref.shape[0]
    H = h_s.shape[1]

    @pl.when(c == 0)
    def _():
        h_s[...] = jnp.zeros_like(h_s)
        c_s[...] = jnp.zeros_like(c_s)

    def step(t, carry):
        # forward walks the chunk 0..Tc-1; backward walks it Tc-1..0
        tt = (1 - d) * t + d * (Tc - 1 - t)
        h_new, c_new = _lstm_cell(xg_ref[tt], h_s[...], c_s[...], whh_ref, H)
        h_s[...] = h_new
        c_s[...] = c_new
        h_ref[tt] = h_new.astype(h_ref.dtype)
        return carry

    jax.lax.fori_loop(0, Tc, step, 0, unroll=True if Tc <= 32 else 8)


# ----------------------------------------------------------------------------
# Kernel wrappers
# ----------------------------------------------------------------------------
def matmul_bias(x2d, w_t, bias2d, out_dtype=jnp.float32):
    """x2d: (N, K); w_t: (K, M); bias2d: (1, M) -> (N, M)."""
    N, K = x2d.shape
    M = w_t.shape[1]
    rb, Np = _row_block(N)
    cb = _col_block(M)
    if Np != N:
        x2d = jnp.pad(x2d, ((0, Np - N), (0, 0)))
    in_bytes = jnp.dtype(x2d.dtype).itemsize
    cost = pl.CostEstimate(
        flops=2 * Np * K * M + Np * M,
        transcendentals=0,
        bytes_accessed=(Np * K + K * M + M) * in_bytes
                       + Np * M * jnp.dtype(out_dtype).itemsize)
    out = pl.pallas_call(
        _proj1_kernel,
        out_shape=jax.ShapeDtypeStruct((Np, M), out_dtype),
        grid_spec=pltpu.PrefetchScalarGridSpec(
            num_scalar_prefetch=0,
            grid=(Np // rb, M // cb),
            in_specs=[
                pl.BlockSpec((rb, K), lambda r, j: (r, 0)),
                pl.BlockSpec((K, cb), lambda r, j: (0, j)),
                pl.BlockSpec((1, cb), lambda r, j: (0, j)),
            ],
            out_specs=pl.BlockSpec((rb, cb), lambda r, j: (r, j)),
        ),
        compiler_params=pltpu.CompilerParams(
            dimension_semantics=("parallel", "parallel")),
        cost_estimate=cost,
    )(x2d, w_t, bias2d)
    return out if Np == N else out[:N]


def matmul2_bias(a2d, b2d, wa_t, wb_t, bias2d, out_dtype=jnp.float32):
    """a2d @ wa_t + b2d @ wb_t + bias; avoids materializing concat([a, b], -1)."""
    N, Ka = a2d.shape
    Kb = b2d.shape[1]
    M = wa_t.shape[1]
    rb, Np = _row_block(N)
    cb = _col_block(M)
    if Np != N:
        pad = ((0, Np - N), (0, 0))
        a2d = jnp.pad(a2d, pad)
        b2d = jnp.pad(b2d, pad)
    in_bytes = jnp.dtype(a2d.dtype).itemsize
    cost = pl.CostEstimate(
        flops=2 * Np * (Ka + Kb) * M + Np * M,
        transcendentals=0,
        bytes_accessed=(Np * (Ka + Kb) + (Ka + Kb) * M + M) * in_bytes
                       + Np * M * jnp.dtype(out_dtype).itemsize)
    out = pl.pallas_call(
        _proj2_kernel,
        out_shape=jax.ShapeDtypeStruct((Np, M), out_dtype),
        grid_spec=pltpu.PrefetchScalarGridSpec(
            num_scalar_prefetch=0,
            grid=(Np // rb, M // cb),
            in_specs=[
                pl.BlockSpec((rb, Ka), lambda r, j: (r, 0)),
                pl.BlockSpec((rb, Kb), lambda r, j: (r, 0)),
                pl.BlockSpec((Ka, cb), lambda r, j: (0, j)),
                pl.BlockSpec((Kb, cb), lambda r, j: (0, j)),
                pl.BlockSpec((1, cb), lambda r, j: (0, j)),
            ],
            out_specs=pl.BlockSpec((rb, cb), lambda r, j: (r, j)),
        ),
        compiler_params=pltpu.CompilerParams(
            dimension_semantics=("parallel", "parallel")),
        cost_estimate=cost,
    )(a2d, b2d, wa_t, wb_t, bias2d)
    return out if Np == N else out[:N]


def bilstm_layer_recurrence(xg, whhT_f, whhT_b, *, out_dtype=jnp.float32,
                            split_directions=False):
    """Bidirectional LSTM recurrence over precomputed gate pre-activations.

    xg:      (T, B, 8H) = [x@Wih_f^T + b_f | x@Wih_b^T + b_b] along features.
    whhT_*:  (H, 4H) transposed recurrent weights.
    Returns (h_fwd, h_bwd), each (T, B, H) in natural time order.
    """
    T, B, G2 = xg.shape
    H = whhT_f.shape[0]
    G = 4 * H
    assert G2 == 2 * G
    gate_bytes = jnp.dtype(xg.dtype).itemsize
    out_bytes = jnp.dtype(out_dtype).itemsize

    Tc = _choose_time_chunk(T, B, H, gate_bytes, out_bytes)
    NC = T // Tc
    vmem_limit = int(min(64 << 20,                                   # v7x-safe cap
                         max(32 << 20,
                             _recurrence_block_bytes(Tc, B, H, gate_bytes,
                                                     out_bytes) + (8 << 20))))
    cost = pl.CostEstimate(
        flops=2 * T * (2 * B * H * 4 * H + 12 * B * H),
        transcendentals=2 * T * 5 * B * H,
        bytes_accessed=(T * B * 8 * H + 2 * H * 4 * H) * gate_bytes
                       + 2 * T * B * H * out_bytes)
    # When 4H is a multiple of 128 the fwd/bwd halves of xg are legal lane-aligned
    # column blocks of the SAME array (no HBM slicing / copies needed).
    lane_ok = (G % 128) == 0

    if split_directions:
        # v7x path: direction axis size 2 marked "parallel" -> each TensorCore runs
        # one direction.  Time axis stays "arbitrary" so the h/c carry is valid.
        whh = jnp.stack([whhT_f, whhT_b])                            # (2, H, 4H)
        if lane_ok:
            gates_arr = xg                                           # (T, B, 8H)
            gates_spec = pl.BlockSpec(
                (Tc, B, G),
                lambda d, c: ((1 - d) * c + d * (NC - 1 - c), 0, d))
        else:
            gates_arr = jnp.stack([xg[..., :G], xg[..., G:]])        # (2, T, B, 4H)
            gates_spec = pl.BlockSpec(
                (None, Tc, B, G),
                lambda d, c: (d, (1 - d) * c + d * (NC - 1 - c), 0, 0))
        out = pl.pallas_call(
            _lstm_dir_chunk_kernel,
            out_shape=jax.ShapeDtypeStruct((2, T, B, H), out_dtype),
            grid_spec=pltpu.PrefetchScalarGridSpec(
                num_scalar_prefetch=0,
                grid=(2, NC),
                in_specs=[
                    gates_spec,
                    pl.BlockSpec((None, H, G), lambda d, c: (d, 0, 0)),
                ],
                out_specs=pl.BlockSpec(
                    (None, Tc, B, H),
                    lambda d, c: (d, (1 - d) * c + d * (NC - 1 - c), 0, 0)),
                scratch_shapes=[pltpu.VMEM((B, H), jnp.float32)] * 2,  # h, c
            ),
            compiler_params=pltpu.CompilerParams(
                dimension_semantics=("parallel", "arbitrary"),
                vmem_limit_bytes=vmem_limit),
            cost_estimate=cost,
        )(gates_arr, whh)
        return out[0], out[1]

    # Default (1-TC chips, v5e/v6e): fuse fwd+bwd in one kernel so the two
    # independent per-timestep dependence chains interleave in the VLIW slots.
    if lane_ok:
        xgf_arr, xgb_arr = xg, xg
        f_last, b_last = 0, 1
    else:
        xgf_arr, xgb_arr = xg[..., :G], xg[..., G:]
        f_last, b_last = 0, 0
    h_f, h_b = pl.pallas_call(
        _bilstm_chunk_kernel,
        out_shape=(jax.ShapeDtypeStruct((T, B, H), out_dtype),
                   jax.ShapeDtypeStruct((T, B, H), out_dtype)),
        grid_spec=pltpu.PrefetchScalarGridSpec(
            num_scalar_prefetch=0,
            grid=(NC,),
            in_specs=[
                # forward gates: chunks in natural order (fwd column half)
                pl.BlockSpec((Tc, B, G), lambda c: (c, 0, f_last)),
                # backward gates: chunks in reversed order (no jnp.flip HBM traffic)
                pl.BlockSpec((Tc, B, G), lambda c: (NC - 1 - c, 0, b_last)),
                pl.BlockSpec((H, G), lambda c: (0, 0)),
                pl.BlockSpec((H, G), lambda c: (0, 0)),
            ],
            out_specs=[pl.BlockSpec((Tc, B, H), lambda c: (c, 0, 0)),
                       pl.BlockSpec((Tc, B, H), lambda c: (NC - 1 - c, 0, 0))],
            scratch_shapes=[pltpu.VMEM((B, H), jnp.float32)] * 4,  # hf, cf, hb, cb
        ),
        compiler_params=pltpu.CompilerParams(
            dimension_semantics=("arbitrary",),      # time recurrence is sequential
            vmem_limit_bytes=vmem_limit),
        cost_estimate=cost,
    )(xgf_arr, xgb_arr, whhT_f, whhT_b)
    return h_f, h_b


# ----------------------------------------------------------------------------
# Full forward pass
# ----------------------------------------------------------------------------
def bidirectional_lstm_forward(x, params, *, matmul_dtype=jnp.float32,
                               split_directions=False):
    """Full BidirectionalLSTM.forward. x: (T, B, nIn) -> (T, B, nOut).

    matmul_dtype=jnp.bfloat16 halves HBM/VMEM traffic of weights, activations and
    the stored gate pre-activations and boosts MXU throughput (f32 accumulation);
    gate math / carries stay f32.  Default f32 matches PyTorch numerics tightly.
    split_directions=True runs the two LSTM directions on a parallel grid axis
    (one per TensorCore on v7x); keep False on single-core chips (v5e/v6e).
    """
    T, B, _ = x.shape
    f32 = jnp.float32
    md = matmul_dtype
    h_f = h_b = None

    for li, layer in enumerate(params["lstm"]):
        (wih_f, whh_f, bih_f, bhh_f), (wih_b, whh_b, bih_b, bhh_b) = layer
        H = whh_f.shape[1]
        bias_cat = jnp.concatenate(
            [(bih_f + bhh_f).reshape(1, 4 * H),
             (bih_b + bhh_b).reshape(1, 4 * H)], axis=1).astype(f32)   # (1, 8H)

        if li == 0:
            # One fused, time-parallel GEMM for BOTH directions: the activation
            # matrix is read from HBM once; output width M = 8H is lane-dense.
            x2d = x.reshape(T * B, -1).astype(md)
            w_cat = jnp.concatenate([wih_f.T, wih_b.T], axis=1).astype(md)
            xg = matmul_bias(x2d, w_cat, bias_cat, out_dtype=md)
        else:
            # Consume the previous layer's (fwd, bwd) halves without concat and
            # compute both directions' gates in one pass:
            #   [hf | hb] @ W_ih^T == hf @ W_ih[:, :Hin]^T + hb @ W_ih[:, Hin:]^T
            Hin = h_f.shape[-1]
            hf2d = h_f.reshape(T * B, Hin)
            hb2d = h_b.reshape(T * B, Hin)
            wa_cat = jnp.concatenate(
                [wih_f[:, :Hin].T, wih_b[:, :Hin].T], axis=1).astype(md)
            wb_cat = jnp.concatenate(
                [wih_f[:, Hin:].T, wih_b[:, Hin:].T], axis=1).astype(md)
            xg = matmul2_bias(hf2d, hb2d, wa_cat, wb_cat, bias_cat, out_dtype=md)

        h_f, h_b = bilstm_layer_recurrence(
            xg.reshape(T, B, 8 * H),
            whh_f.T.astype(md), whh_b.T.astype(md),
            out_dtype=md, split_directions=split_directions)
        # TODO(synk): nn.LSTM inter-layer dropout is training-only; eval => no-op.

    # Final Linear on the flattened sequence, again without concatenating fwd/bwd.
    Hl = h_f.shape[-1]
    W = params["emb_w"]
    out2d = matmul2_bias(h_f.reshape(T * B, Hl), h_b.reshape(T * B, Hl),
                         W[:, :Hl].T.astype(md), W[:, Hl:].T.astype(md),
                         params["emb_b"].reshape(1, -1).astype(f32),
                         out_dtype=f32)
    return out2d.reshape(T, B, -1)


# ----------------------------------------------------------------------------
# Pure-JAX reference (for correctness checking)
# ----------------------------------------------------------------------------
def _ref_lstm_dir(x, w_ih, w_hh, b_ih, b_hh):
    H = w_hh.shape[1]
    B = x.shape[1]

    def step(carry, x_t):
        h, c = carry
        gates = x_t @ w_ih.T + h @ w_hh.T + b_ih + b_hh
        i, f, g, o = jnp.split(gates, 4, axis=-1)
        i, f, o = jax.nn.sigmoid(i), jax.nn.sigmoid(f), jax.nn.sigmoid(o)
        g = jnp.tanh(g)
        c = f * c + i * g
        h = o * jnp.tanh(c)
        return (h, c), h

    init = (jnp.zeros((B, H), jnp.float32), jnp.zeros((B, H), jnp.float32))
    _, hs = jax.lax.scan(step, init, x)
    return hs


def _ref_forward(x, params):
    layer_in = x
    for layer in params["lstm"]:
        (wih_f, whh_f, bih_f, bhh_f), (wih_b, whh_b, bih_b, bhh_b) = layer
        h_fwd = _ref_lstm_dir(layer_in, wih_f, whh_f, bih_f, bhh_f)
        h_bwd = jnp.flip(
            _ref_lstm_dir(jnp.flip(layer_in, 0), wih_b, whh_b, bih_b, bhh_b), 0)
        layer_in = jnp.concatenate([h_fwd, h_bwd], axis=-1)
    T, B, Hh = layer_in.shape
    out = layer_in.reshape(T * B, Hh) @ params["emb_w"].T + params["emb_b"]
    return out.reshape(T, B, -1)


# ----------------------------------------------------------------------------
# Deterministic parameter init (shapes match nn.LSTM + nn.Linear)
# ----------------------------------------------------------------------------
def init_params(key, nIn, nHidden, nLayer, nOut):
    H = nHidden
    scale = 1.0 / jnp.sqrt(jnp.float32(H))
    lstm_layers = []
    for l in range(nLayer):
        in_size = nIn if l == 0 else 2 * H
        dirs = []
        for _ in range(2):  # forward, backward
            key, k1, k2, k3, k4 = jax.random.split(key, 5)
            w_ih = jax.random.uniform(k1, (4 * H, in_size), jnp.float32, -scale, scale)
            w_hh = jax.random.uniform(k2, (4 * H, H), jnp.float32, -scale, scale)
            b_ih = jax.random.uniform(k3, (4 * H,), jnp.float32, -scale, scale)
            b_hh = jax.random.uniform(k4, (4 * H,), jnp.float32, -scale, scale)
            dirs.append((w_ih, w_hh, b_ih, b_hh))
        lstm_layers.append(tuple(dirs))
    key, k1, k2 = jax.random.split(key, 3)
    emb_scale = 1.0 / jnp.sqrt(jnp.float32(2 * H))
    emb_w = jax.random.uniform(k1, (nOut, 2 * H), jnp.float32, -emb_scale, emb_scale)
    emb_b = jax.random.uniform(k2, (nOut,), jnp.float32, -emb_scale, emb_scale)
    return {"lstm": lstm_layers, "emb_w": emb_w, "emb_b": emb_b}


# ----------------------------------------------------------------------------
if __name__ == "__main__":
    T, B = 8, 2
    nIn, nHidden, nLayer, nOut = 16, 32, 2, 10
    dropout = 0.0  # inference semantics: dropout inactive

    key = jax.random.PRNGKey(0)
    key, kx = jax.random.split(key)
    x = jax.random.normal(kx, (T, B, nIn), jnp.float32)
    params = init_params(key, nIn, nHidden, nLayer, nOut)

    ref = jax.block_until_ready(_ref_forward(x, params))

    # 1) f32, fused fwd+bwd recurrence (default; best on 1-TC v5e/v6e).
    out = jax.block_until_ready(bidirectional_lstm_forward(x, params))
    assert out.shape == (T, B, nOut), out.shape
    assert jnp.allclose(out, ref, atol=2e-4, rtol=2e-4), float(
        jnp.max(jnp.abs(out - ref)))

    # 2) f32, direction-parallel recurrence (v7x: one direction per TensorCore).
    out_split = jax.block_until_ready(
        bidirectional_lstm_forward(x, params, split_directions=True))
    assert jnp.allclose(out_split, ref, atol=2e-4, rtol=2e-4), float(
        jnp.max(jnp.abs(out_split - ref)))

    # 3) bf16 matmul operands / stored gates with f32 accumulation + gate math.
    out_bf16 = jax.block_until_ready(
        bidirectional_lstm_forward(x, params, matmul_dtype=jnp.bfloat16))
    assert jnp.allclose(out_bf16, ref, atol=1e-1, rtol=1e-1), float(
        jnp.max(jnp.abs(out_bf16 - ref)))

    print("KERNEL_OK")
</pallas_src>

<mosaic_0001>
module attributes {stable_mosaic.version = 11 : i64} {
  func.func @_proj1_kernel(%arg0: i32, %arg1: i32, %arg2: memref<16x16xf32, #tpu.memory_space<vmem>>, %arg3: memref<16x256xf32, #tpu.memory_space<vmem>>, %arg4: memref<1x256xf32, #tpu.memory_space<vmem>>, %arg5: memref<16x256xf32, #tpu.memory_space<vmem>>) attributes {dimension_semantics = [#tpu.dimension_semantics<parallel>, #tpu.dimension_semantics<parallel>], iteration_bounds = array<i64: 1, 1>, scalar_prefetch = 0 : i64, scratch_operands = 0 : i64, tpu.core_type = #tpu.core_type<tc>, window_params = [{transform_indices = @transform_0, window_bounds = array<i64: 16, 16>}, {transform_indices = @transform_1, window_bounds = array<i64: 16, 256>}, {transform_indices = @transform_2, window_bounds = array<i64: 1, 256>}, {transform_indices = @transform_3, window_bounds = array<i64: 16, 256>}]} {
    %c0 = arith.constant 0 : index
    %c0_0 = arith.constant 0 : index
    %0 = vector.load %arg2[%c0, %c0_0] : memref<16x16xf32, #tpu.memory_space<vmem>>, vector<16x16xf32>
    %c0_1 = arith.constant 0 : index
    %c0_2 = arith.constant 0 : index
    %1 = vector.load %arg3[%c0_1, %c0_2] : memref<16x256xf32, #tpu.memory_space<vmem>>, vector<16x256xf32>
    %cst = arith.constant dense<0.000000e+00> : vector<16x256xf32>
    %2 = tpu.matmul %0, %1, %cst {dimension_numbers = #tpu.dot_dimension_numbers<[1], [0], [0], [1], [0, 0, 1, 1], [], []>} : vector<16x16xf32>, vector<16x256xf32>, vector<16x256xf32> -> vector<16x256xf32>
    %c0_3 = arith.constant 0 : index
    %c0_4 = arith.constant 0 : index
    %3 = vector.load %arg4[%c0_3, %c0_4] : memref<1x256xf32, #tpu.memory_space<vmem>>, vector<1x256xf32>
    %4 = vector.broadcast %3 : vector<1x256xf32> to vector<16x256xf32>
    %5 = arith.addf %2, %4 : vector<16x256xf32>
    %c0_5 = arith.constant 0 : index
    %c0_6 = arith.constant 0 : index
    %6 = vector.load %arg5[%c0_5, %c0_6] : memref<16x256xf32, #tpu.memory_space<vmem>>, vector<16x256xf32>
    tpu.vector_store %arg5[%c0_5, %c0_6], %5 {strides = array<i32>} : memref<16x256xf32, #tpu.memory_space<vmem>>, vector<16x256xf32>,
    return
  }
  func.func @transform_0(%arg0: i32, %arg1: i32) -> (i32, i32) {
    %c0_i32 = arith.constant 0 : i32
    %c0_i32_0 = arith.constant 0 : i32
    return %arg0, %c0_i32 : i32, i32
  }
  func.func @transform_1(%arg0: i32, %arg1: i32) -> (i32, i32) {
    %c0_i32 = arith.constant 0 : i32
    %c0_i32_0 = arith.constant 0 : i32
    return %c0_i32, %arg1 : i32, i32
  }
  func.func @transform_2(%arg0: i32, %arg1: i32) -> (i32, i32) {
    %c0_i32 = arith.constant 0 : i32
    %c0_i32_0 = arith.constant 0 : i32
    return %c0_i32, %arg1 : i32, i32
  }
  func.func @transform_3(%arg0: i32, %arg1: i32) -> (i32, i32) {
    %c0_i32 = arith.constant 0 : i32
    return %arg0, %arg1 : i32, i32
  }
}

</mosaic_0001>

<bundles_post_ra>
// kernel: tpu_custom_call.1
= control target key start
LH: loop header
LB: loop body
LE: loop exit
PB: predicated region body
PF: predicated region fallthrough
CT: control target
= control target key end

     0   :  { %8 = vsyncpa [#allocation3], 0  ;;  %s293_s0 = inlined_call_operand.hbm [shape: f32[16,16], index: 0, kind: input, shape index: {}]   ;;  %s294_s1 = inlined_call_operand.hbm [shape: f32[16,256], index: 1, kind: input, shape index: {}]   ;;  %s295_s2 = inlined_call_operand.vmem [shape: f32[1,256], index: 2, kind: input, shape index: {}]   ;;  %s296_s3 = inlined_call_operand.hbm [shape: f32[16,256], index: 3, kind: output, shape index: {}]  }
   0x1   :  { %9 = vsyncpa [#allocation6], 0 }
   0x2   :  { %10 = vsyncpa [#allocation4], 0  ;;  %s247_s12 = smov [#allocation2]  }
   0x3   :  { %s16_s13 = sshll.u32 %s247_s12, 4  ;;  %s17_s13 = int_to_ptr.vmem [resolvable:$true] %s16_s13 }
   0x4   :  { %s189_s14 = scalar_lea.vmem %s17_s13, 256  ;;  %p194_p1 = scmp.lt.s32.totalorder %s17_s13, %s17_s13 }
   0x5   :  { %p190_p0 = scmp.ne.s32.totalorder %s17_s13, %s189_s14  ;;  %p195_p2 = scmp.lt.s32.totalorder %s189_s14, %s189_s14 }
   0x7   :  { %p196_p3 = por %p195_p2, %p194_p1 }
   0x9   :  { %p197_p4 = pnand %p196_p3, %p190_p0 }
   0xb   :  { %200 = shalt.err (!%p197_p4)
}
   0xc   :  { %s248_s15 = smov 128   ;;  %s249_s16 = smov 8  }
   0xd   :  { %22 = dma.hbm_to_vmem [thread:$0]  %s293_s0, 256, %s17_s13, [#allocation3], %s248_s15, %s248_s15, %s249_s16  }
   0xe   :  { %s250_s19 = smov [#allocation5]  }
   0xf   :  { %s28_s20 = sshll.u32 %s250_s19, 4  ;;  %s29_s20 = int_to_ptr.vmem [resolvable:$true] %s28_s20 }
  0x10   :  { %s209_s21 = scalar_lea.vmem %s29_s20, 512  ;;  %p214_p6 = scmp.lt.s32.totalorder %s29_s20, %s29_s20 }
  0x11   :  { %p210_p5 = scmp.ne.s32.totalorder %s29_s20, %s209_s21  ;;  %p215_p7 = scmp.lt.s32.totalorder %s209_s21, %s209_s21 }
  0x13   :  { %p216_p8 = por %p215_p7, %p214_p6 }
  0x15   :  { %p217_p9 = pnand %p216_p8, %p210_p5 }
  0x17   :  { %220 = shalt.err (!%p217_p9)
}
  0x18   :  { %s251_s22 = smov 256   ;;  %s252_s23 = smov 16  }
  0x19   :  { %34 = dma.hbm_to_vmem [thread:$0]  %s294_s1, 512, %s29_s20, [#allocation6], %s251_s22, %s251_s22, %s252_s23  }
  0x1a   :  { %241 = dma.done.wait [#allocation3], 256  }
  0x1b   :  { %242 = vsyncadd [#allocation3], 4294967040 }
  0x1c   :  { %243 = dma.done.wait [#allocation6], 512  }
  0x1d   :  { %244 = vsyncadd [#allocation6], 4294966784  ;;  %v253_v0 = vmov 0.0   ;;  %v48_v1 = vld [vmem:[#allocation5 + $0x18] sm:$0xff]  ;;  %v47_v2 = vld [vmem:[#allocation5 + $0x10] sm:$0xff]  ;;  %vm61_vm0 = vcmask 130048   ;;  %v51_v7 = vlaneseq }
  0x1e   :  { %132 = vmatprep.mubr.f32.mxu0 %v253_v0  ;;  %138 = vmatprep.mubr.f32.mxu1 %v253_v0  ;;  %v46_v3 = vld [vmem:[#allocation5 + $0x8] sm:$0xff]  ;;  %v45_v4 = vld [vmem:[#allocation5] sm:$0xff]  ;;  %v43_v5 = vld [vmem:[#allocation2] sm:$0xff]  ;;  %s254_s26 = smov [#allocation7]  }
  0x1f   :  { %96 = vmatprep.subr.mxu0 %v48_v1  ;;  %169 = vmatprep.subr.mxu1 %v48_v1  ;;  %v44_v6 = vld [vmem:[#allocation2 + $0x8] sm:$0xff]  ;;  %v52_v8 = vshrl.u32 %v51_v7, 7  ;;  %v49_v10 = vld [vmem:[%s295_s2] sm:$0x3]  ;;  %s154_s27 = sshll.u32 %s254_s26, 4  ;;  %s155_s27 = int_to_ptr.vmem [resolvable:$true] %s154_s27 }
  0x20   :  { %97 = vmatpush1.msra.mxu0 %v47_v2  ;;  %171 = vmatpush1.msra.mxu1 %v47_v2  ;;  %s221_s28 = scalar_lea.vmem %s155_s27, 512  ;;  %p226_p11 = scmp.lt.s32.totalorder %s155_s27, %s155_s27 }
  0x21   :  { %98 = vmatprep.subr.mxu0 %v46_v3  ;;  %170 = vmatprep.subr.mxu1 %v46_v3  ;;  %v53_v9 = vsub.s32 0, %v52_v8  ;;  %v57_v11 = vsub.s32 1, %v52_v8  ;;  %p222_p10 = scmp.ne.s32.totalorder %s155_s27, %s221_s28  ;;  %p227_p12 = scmp.lt.s32.totalorder %s221_s28, %s221_s28 }
  0x22   :  { %99 = vmatpush1.msra.mxu0 %v45_v4  ;;  %172 = vmatpush1.msra.mxu1 %v45_v4 }
  0x23   :  { %167 = vmatmul.mubr.msk.f32.vlgmr.msra.gmra.mxu0 %vm61_vm0, %v43_v5  ;;  %168 = vmatmul.mubr.msk.f32.vlgmr.msra.gmra.mxu1 %vm61_vm0, %v44_v6  ;;  %v54_v12 = vrot.slane %v49_v10, %v53_v9  ;;  %v58_v13 = vrot.slane %v49_v10, %v57_v11  ;;  %p228_p13 = por %p227_p12, %p226_p11 }
  0x25   :  { %p229_p0 = pnand %p228_p13, %p222_p10 }
  0xe3   :  { %v134_v14 = vpop.f32.mrf.mxu0  ;;  %v140_v15 = vpop.f32.mrf.mxu1 }
  0xe4   :  { %v135_v16 = vadd.f32 %v134_v14, %v54_v12  ;;  %v141_v17 = vadd.f32 %v140_v15, %v54_v12 }
  0xe5   :  { %v136_v18 = vpop.f32.mrf.mxu0  ;;  %v142_v19 = vpop.f32.mrf.mxu1 }
  0xe6   :  { %145 = vst [vmem:[#allocation7] sm:$0xff] %v135_v16  ;;  %147 = vst [vmem:[#allocation7 + $0x10] sm:$0xff] %v141_v17  ;;  %v137_v20 = vadd.f32 %v136_v18, %v58_v13  ;;  %v143_v21 = vadd.f32 %v142_v19, %v58_v13 }
  0xe8   :  { %146 = vst [vmem:[#allocation7 + $0x8] sm:$0xff] %v137_v20  ;;  %148 = vst [vmem:[#allocation7 + $0x18] sm:$0xff] %v143_v21 }
  0xe9   :  { %232 = shalt.err (!%p229_p0)
}
  0xea   :  { %160 = dma.vmem_to_hbm [thread:$0]  %s155_s27, 512, %s296_s3, [#allocation4], %s251_s22, %s251_s22, %s252_s23  }
  0xeb   :  { %245 = dma.done.wait [#allocation4], 512  }
  0xec   :  { %246 = vsyncadd [#allocation4], 4294966784 }
  0xed   :  { %164 = vsyncpa [#allocation3], 1 }
  0xee   :  { %165 = vsyncpa [#allocation6], 1 }
  0xef   :  { %166 = vsyncpa [#allocation4], 1 }

</bundles_post_ra>
